<compile_context>
chip_gen: v7x
topology: tpu7x:2x2x1
jax: 0.10.0
libtpu: 0.0.40
codegen_flags: <defaults>
</compile_context>

<pallas_src>
import jax
import jax.numpy as jnp
from jax.experimental import pallas as pl
from jax.experimental.pallas import tpu as pltpu

NUM_FEATURE_POINTS = 16
HIDDEN = 256


def _round_up(x, m):
    return (x + m - 1) // m * m


def _head_kernel(x_ref, w1_ref, b1_ref, w2_ref, b2_ref, o_ref):
    # x_ref : (1, Kc, tm)   bf16  im2col columns (taps*channels on sublanes,
    #                             flattened pixels on lanes)
    # w1_ref: (256, Kc)     bf16  conv1 weight (3x3 taps folded into Kc)
    # b1_ref: (256, 1)      f32
    # w2_ref: (K, 256)      bf16  conv2 (1x1) weight
    # b2_ref: (K, 1)        f32
    # o_ref : (1, K, tm)    f32   output slab, already in (channel, pixel) layout
    x = x_ref[0]                                                      # (Kc, tm)
    h = jnp.dot(w1_ref[...], x, preferred_element_type=jnp.float32)  # (256, tm)
    h = jnp.maximum(h + b1_ref[...], 0.0).astype(jnp.bfloat16)       # relu
    o = jnp.dot(w2_ref[...], h, preferred_element_type=jnp.float32)  # (K, tm)
    o_ref[0] = (o + b2_ref[...]).astype(o_ref.dtype)


def keypoint_head_forward(x_nchw, w1, b1, w2, b2, *, tm=512):
    """x_nchw: (N, Cin, H, W) f32.  w1: (256, Cin, 3, 3), b1: (256,),
    w2: (K, 256, 1, 1), b2: (K,).  Returns (N, K, H, W) f32 (PyTorch parity).

    On v5e/v6e (128 MiB VMEM) tm can be raised to 1024 for large feature maps;
    512 is safe everywhere including v7x."""
    N, C, H, W = x_nchw.shape
    hidden = w1.shape[0]
    K = w2.shape[0]
    L = H * W

    # Contraction dim: 9*C taps, zero-padded (full-lane w1 rows, clean MXU shape).
    Kc = _round_up(9 * C, 128)

    # Pixel tile: lane-dense (multiple of 128), clamped to the feature-map size.
    tm = _round_up(max(128, min(tm, _round_up(L, 128))), 128)
    L_pad = _round_up(L, tm)

    # ---- wrapper im2col, built directly from NCHW (no layout transpose) ----
    xb = x_nchw.astype(jnp.bfloat16)
    xp = jnp.pad(xb, ((0, 0), (0, 0), (1, 1), (1, 1)))            # (N, C, H+2, W+2)
    taps = [xp[:, :, dh:dh + H, dw:dw + W]
            for dh in range(3) for dw in range(3)]                # 9 x (N, C, H, W)
    xc = jnp.stack(taps, axis=1).reshape(N, 9 * C, L)             # (N, 9C, L)
    xc = jnp.pad(xc, ((0, 0), (0, Kc - 9 * C), (0, L_pad - L)))   # (N, Kc, L_pad)

    # conv1 weight (256, C, 3, 3) -> (o, kh, kw, c) -> (256, 9C) -> pad to Kc
    w1_mat = jnp.transpose(w1, (0, 2, 3, 1)).reshape(hidden, 9 * C)
    w1_mat = jnp.pad(w1_mat, ((0, 0), (0, Kc - 9 * C))).astype(jnp.bfloat16)
    b1_col = b1.reshape(hidden, 1).astype(jnp.float32)
    # conv2 is a 1x1 conv -> (K, 256)
    w2_mat = w2.reshape(K, hidden).astype(jnp.bfloat16)
    b2_col = b2.reshape(K, 1).astype(jnp.float32)

    grid = (N, L_pad // tm)

    flops = 2 * N * L_pad * (Kc * hidden + hidden * K)
    bytes_accessed = int(xc.size * 2 + w1_mat.size * 2 + w2_mat.size * 2
                         + b1_col.size * 4 + b2_col.size * 4
                         + N * K * L_pad * 4)

    out = pl.pallas_call(
        _head_kernel,
        out_shape=jax.ShapeDtypeStruct((N, K, L_pad), jnp.float32),
        grid=grid,
        in_specs=[
            pl.BlockSpec((1, Kc, tm), lambda n, r: (n, 0, r)),    # im2col tile
            pl.BlockSpec((hidden, Kc), lambda n, r: (0, 0)),      # w1 (resident)
            pl.BlockSpec((hidden, 1), lambda n, r: (0, 0)),       # b1
            pl.BlockSpec((K, hidden), lambda n, r: (0, 0)),       # w2
            pl.BlockSpec((K, 1), lambda n, r: (0, 0)),            # b2
        ],
        out_specs=pl.BlockSpec((1, K, tm), lambda n, r: (n, 0, r)),
        compiler_params=pltpu.CompilerParams(
            dimension_semantics=("parallel", "parallel")),
        cost_estimate=pl.CostEstimate(
            flops=flops, transcendentals=0, bytes_accessed=bytes_accessed),
    )(xc, w1_mat, b1_col, w2_mat, b2_col)

    # Output is already channels-first: crop padded pixels, reshape to NCHW.
    return out[:, :, :L].reshape(N, K, H, W)


def _reference(x_nchw, w1, b1, w2, b2):
    # pure-JAX f32 reference (lax conv) for correctness check
    h = jax.lax.conv_general_dilated(
        x_nchw, w1, window_strides=(1, 1), padding=((1, 1), (1, 1)),
        dimension_numbers=("NCHW", "OIHW", "NCHW"))
    h = jax.nn.relu(h + b1[None, :, None, None])
    o = jax.lax.conv_general_dilated(
        h, w2, window_strides=(1, 1), padding=((0, 0), (0, 0)),
        dimension_numbers=("NCHW", "OIHW", "NCHW"))
    return o + b2[None, :, None, None]


if __name__ == "__main__":
    key = jax.random.PRNGKey(0)
    kx, k1, kb1, k2, kb2 = jax.random.split(key, 5)

    N, Cin, H, W = 2, 4, 16, 16
    x = jax.random.normal(kx, (N, Cin, H, W), jnp.float32)

    # deterministic synthetic parameters (shapes per nn.Conv2d in __init__)
    w1 = 0.05 * jax.random.normal(k1, (HIDDEN, Cin, 3, 3), jnp.float32)
    b1 = 0.01 * jax.random.normal(kb1, (HIDDEN,), jnp.float32)
    w2 = 0.05 * jax.random.normal(k2, (NUM_FEATURE_POINTS, HIDDEN, 1, 1), jnp.float32)
    b2 = 0.01 * jax.random.normal(kb2, (NUM_FEATURE_POINTS,), jnp.float32)

    out = keypoint_head_forward(x, w1, b1, w2, b2)
    out = jax.block_until_ready(out)

    ref = _reference(x, w1, b1, w2, b2)
    assert out.shape == (N, NUM_FEATURE_POINTS, H, W), out.shape
    max_err = float(jnp.max(jnp.abs(out - ref)))
    # bf16 operands with f32 accumulation: tolerance loosened vs an f32 kernel.
    assert jnp.allclose(out, ref, atol=3e-2, rtol=3e-2), max_err

    print("KERNEL_OK")
</pallas_src>

<mosaic_0001>
module attributes {stable_mosaic.version = 11 : i64} {
  func.func @_head_kernel(%arg0: i32, %arg1: i32, %arg2: memref<1x128x256xbf16, #tpu.memory_space<vmem>>, %arg3: memref<256x128xbf16, #tpu.memory_space<vmem>>, %arg4: memref<256x1xf32, #tpu.memory_space<vmem>>, %arg5: memref<16x256xbf16, #tpu.memory_space<vmem>>, %arg6: memref<16x1xf32, #tpu.memory_space<vmem>>, %arg7: memref<1x16x256xf32, #tpu.memory_space<vmem>>) attributes {dimension_semantics = [#tpu.dimension_semantics<parallel>, #tpu.dimension_semantics<parallel>], iteration_bounds = array<i64: 2, 1>, scalar_prefetch = 0 : i64, scratch_operands = 0 : i64, tpu.core_type = #tpu.core_type<tc>, window_params = [{transform_indices = @transform_0, window_bounds = array<i64: 1, 128, 256>}, {pipeline_mode = #tpu.pipeline_mode<synchronous>, transform_indices = @transform_1, window_bounds = array<i64: 256, 128>}, {pipeline_mode = #tpu.pipeline_mode<synchronous>, transform_indices = @transform_2, window_bounds = array<i64: 256, 1>}, {pipeline_mode = #tpu.pipeline_mode<synchronous>, transform_indices = @transform_3, window_bounds = array<i64: 16, 256>}, {pipeline_mode = #tpu.pipeline_mode<synchronous>, transform_indices = @transform_4, window_bounds = array<i64: 16, 1>}, {transform_indices = @transform_5, window_bounds = array<i64: 1, 16, 256>}]} {
    %c0 = arith.constant 0 : index
    %c0_0 = arith.constant 0 : index
    %c0_1 = arith.constant 0 : index
    %0 = vector.load %arg2[%c0, %c0_0, %c0_1] : memref<1x128x256xbf16, #tpu.memory_space<vmem>>, vector<1x128x256xbf16>
    %1 = vector.shape_cast %0 : vector<1x128x256xbf16> to vector<128x256xbf16>
    %c0_2 = arith.constant 0 : index
    %c0_3 = arith.constant 0 : index
    %2 = vector.load %arg3[%c0_2, %c0_3] : memref<256x128xbf16, #tpu.memory_space<vmem>>, vector<256x128xbf16>
    %cst = arith.constant dense<0.000000e+00> : vector<256x256xf32>
    %3 = tpu.matmul %2, %1, %cst {dimension_numbers = #tpu.dot_dimension_numbers<[1], [0], [0], [1], [0, 0, 1, 1], [], []>} : vector<256x128xbf16>, vector<128x256xbf16>, vector<256x256xf32> -> vector<256x256xf32>
    %c0_4 = arith.constant 0 : index
    %c0_5 = arith.constant 0 : index
    %4 = vector.load %arg4[%c0_4, %c0_5] : memref<256x1xf32, #tpu.memory_space<vmem>>, vector<256x1xf32>
    %5 = vector.broadcast %4 : vector<256x1xf32> to vector<256x256xf32>
    %6 = arith.addf %3, %5 : vector<256x256xf32>
    %cst_6 = arith.constant 0.000000e+00 : f32
    %7 = vector.broadcast %cst_6 : f32 to vector<256x256xf32>
    %8 = arith.maximumf %6, %7 : vector<256x256xf32>
    %9 = arith.truncf %8 : vector<256x256xf32> to vector<256x256xbf16>
    %c0_7 = arith.constant 0 : index
    %c0_8 = arith.constant 0 : index
    %10 = vector.load %arg5[%c0_7, %c0_8] : memref<16x256xbf16, #tpu.memory_space<vmem>>, vector<16x256xbf16>
    %cst_9 = arith.constant dense<0.000000e+00> : vector<16x256xf32>
    %11 = tpu.matmul %10, %9, %cst_9 {dimension_numbers = #tpu.dot_dimension_numbers<[1], [0], [0], [1], [0, 0, 1, 1], [], []>} : vector<16x256xbf16>, vector<256x256xbf16>, vector<16x256xf32> -> vector<16x256xf32>
    %c0_10 = arith.constant 0 : index
    %c0_11 = arith.constant 0 : index
    %12 = vector.load %arg6[%c0_10, %c0_11] : memref<16x1xf32, #tpu.memory_space<vmem>>, vector<16x1xf32>
    %13 = vector.broadcast %12 : vector<16x1xf32> to vector<16x256xf32>
    %14 = arith.addf %11, %13 : vector<16x256xf32>
    %c0_12 = arith.constant 0 : index
    %c0_13 = arith.constant 0 : index
    %c0_14 = arith.constant 0 : index
    %15 = vector.load %arg7[%c0_12, %c0_13, %c0_14] : memref<1x16x256xf32, #tpu.memory_space<vmem>>, vector<1x16x256xf32>
    %16 = vector.shape_cast %15 : vector<1x16x256xf32> to vector<16x256xf32>
    %17 = vector.shape_cast %14 : vector<16x256xf32> to vector<1x16x256xf32>
    tpu.vector_store %arg7[%c0_12, %c0_13, %c0_14], %17 {strides = array<i32>} : memref<1x16x256xf32, #tpu.memory_space<vmem>>, vector<1x16x256xf32>,
    return
  }
  func.func @transform_0(%arg0: i32, %arg1: i32) -> (i32, i32, i32) {
    %c0_i32 = arith.constant 0 : i32
    %c0_i32_0 = arith.constant 0 : i32
    return %arg0, %c0_i32, %arg1 : i32, i32, i32
  }
  func.func @transform_1(%arg0: i32, %arg1: i32) -> (i32, i32) {
    %c0_i32 = arith.constant 0 : i32
    %c0_i32_0 = arith.constant 0 : i32
    %c0_i32_1 = arith.constant 0 : i32
    return %c0_i32, %c0_i32_0 : i32, i32
  }
  func.func @transform_2(%arg0: i32, %arg1: i32) -> (i32, i32) {
    %c0_i32 = arith.constant 0 : i32
    %c0_i32_0 = arith.constant 0 : i32
    %c0_i32_1 = arith.constant 0 : i32
    return %c0_i32, %c0_i32_0 : i32, i32
  }
  func.func @transform_3(%arg0: i32, %arg1: i32) -> (i32, i32) {
    %c0_i32 = arith.constant 0 : i32
    %c0_i32_0 = arith.constant 0 : i32
    %c0_i32_1 = arith.constant 0 : i32
    return %c0_i32, %c0_i32_0 : i32, i32
  }
  func.func @transform_4(%arg0: i32, %arg1: i32) -> (i32, i32) {
    %c0_i32 = arith.constant 0 : i32
    %c0_i32_0 = arith.constant 0 : i32
    %c0_i32_1 = arith.constant 0 : i32
    return %c0_i32, %c0_i32_0 : i32, i32
  }
  func.func @transform_5(%arg0: i32, %arg1: i32) -> (i32, i32, i32) {
    %c0_i32 = arith.constant 0 : i32
    %c0_i32_0 = arith.constant 0 : i32
    return %arg0, %c0_i32, %arg1 : i32, i32, i32
  }
}

</mosaic_0001>

<bundles_post_ra>
// kernel: tpu_custom_call.1
= control target key start
LH: loop header
LB: loop body
LE: loop exit
PB: predicated region body
PF: predicated region fallthrough
CT: control target
= control target key end

     0   :  { %10 = vsyncpa [#allocation3], 0  ;;  %s1766_s0 = inlined_call_operand.vmem [shape: bf16[2,128,256], index: 0, kind: input, shape index: {}]   ;;  %s1767_s1 = inlined_call_operand.hbm [shape: bf16[256,128], index: 1, kind: input, shape index: {}]   ;;  %s1768_s2 = inlined_call_operand.vmem [shape: f32[256,1], index: 2, kind: input, shape index: {}]   ;;  %s1769_s3 = inlined_call_operand.vmem [shape: bf16[16,256], index: 3, kind: input, shape index: {}]   ;;  %s1770_s4 = inlined_call_operand.vmem [shape: f32[16,1], index: 4, kind: input, shape index: {}]   ;;  %s1771_s5 = inlined_call_operand.hbm [shape: f32[2,16,256], index: 5, kind: output, shape index: {}]  }
   0x1   :  { %11 = vsyncpa [#allocation4], 0 }
   0x2   :  { %13 = vsyncpa [#allocation4 + $0x1], 0  ;;  %s1469_s18 = smov 0   ;;  %s1471_s19 = smov 0  }
   0x3   :  { %s1473_s20 = smov 0   ;;  %s1475_s21 = smov 0  }
   0x4   :  { %s1477_s22 = smov 0   ;;  %s1479_s23 = smov 0  }
   0x5 LB: > { %s1153_s24 = sadd.s32 4294967295, %s1430_s23   ;;  %s1154_s25 = sadd.s32 4294967294, %s1430_s23   ;;  %s1430_s23 = sphi %s1479_s23, %s19_s23   ;;  %s1426_s22 = sphi %s1477_s22, %s1789_s22   ;;  %s1422_s21 = sphi %s1475_s21, %s1788_s21   ;;  %s1418_s20 = sphi %s1473_s20, %s1787_s20   ;;  %s1414_s19 = sphi %s1471_s19, %s1786_s19   ;;  %s1410_s18 = sphi %s1469_s18, %s1785_s18  }
   0x6   : > { %s31_s26 = sadd.s32 1, %s1426_s22  ;;  %s152_s27 = sadd.s32 1, %s1418_s20 }
   0x7   : > { %p33_p0 = scmp.ge.s32.totalorder %s31_s26, 2  ;;  %p162_p1 = scmp.ne.s32.totalorder %s1418_s20, %s1414_s19 }
   0x8   : > { %p163_p2 = scmp.eq.s32.totalorder %s1153_s24, 1  ;;  %p168_p3 = scmp.ne.s32.totalorder %s1414_s19, %s1410_s18 }
   0x9   : > { %s1791_s26 = smov (%p33_p0, %s31_s26), 0  ;;  %p169_p5 = scmp.eq.s32.totalorder %s1154_s25, 1 }
   0xa   : > { %p1509_p4 = por %p163_p2, %p162_p1  ;;  %s147_s29 = ssub.s32 %s1426_s22, %s1791_s26 }
   0xb   : > { %p1155_p6 = scmp.ge.s32.totalorder %s1430_s23, 1  ;;  %p150_p7 = scmp.eq.s32.totalorder %s147_s29, 0 }
   0xc   : > { %s1776_s28 = scalar_select %p1509_p4, 1, 0 }
   0xd   : > { %p1516_p8 = por %p169_p5, %p168_p3  ;;  %p176_p9 = scmp.lt.s32.totalorder %s1430_s23, 3 }
   0xe   : > { %s1522_s6 = scalar_select %p150_p7, %s1418_s20, %s152_s27  }
   0xf   : > { %s1777_s30 = scalar_select %p1516_p8, 1, 0 }
  0x10   : > { %p1524_p10 = pnand %p1155_p6, %p176_p9  ;;  %p1528_p11 = scmp.eq.s32.totalorder %s1153_s24, 0 }
  0x11   : > { %s1432_s9 = smov [#allocation2]   ;;  %s1320_s14 = scalar_lea.hbm %s1767_s1, 2048 }
  0x12   : > { %s1778_s7 = scalar_select %p1524_p10, 1, 0 }
  0x13   : > { %s1779_s8 = scalar_select %p1528_p11, 1, 0 }
  0x14   : > { %p1210_p12 = pneg %p1524_p10  ;;  %s188_s10 = sshll.u32 %s1432_s9, 4  ;;  %s189_s10 = int_to_ptr.vmem [resolvable:$true] %s188_s10 }
  0x15   : > { %p1321_p0 = scmp.ne.s32.totalorder %s1767_s1, %s1320_s14  ;;  %p1327_p5 = scmp.lt.u32.totalorder %s1320_s14, %s1767_s1 }
  0x16   : > { %p1536_p13 = pnand %p1528_p11, %p1210_p12 }
  0x18   : > { %p1322_p1 = pneg %p1536_p13 }
  0x1a   : > { %p1323_p2 = pnand %p1322_p1, %p1321_p0 }
  0x1c   : > { %p1324_p3 = pneg %p1323_p2 }
  0x1e   : > { %p1329_p6 = pnand %p1327_p5, %p1324_p3 }
  0x20   : > { %1332 = shalt.err (!%p1329_p6)
}
  0x21   : > { %s1333_s25 = scalar_lea.vmem %s189_s10, 2048  ;;  %p1341_p8 = scmp.lt.s32.totalorder %s189_s10, %s189_s10 }
  0x22   : > { %p1334_p7 = scmp.ne.s32.totalorder %s189_s10, %s1333_s25  ;;  %p1342_p4 = scmp.lt.s32.totalorder %s1333_s25, %s1333_s25 }
  0x24   : > { %p1336_p9 = pnand %p1334_p7, %p1322_p1  ;;  %p1343_p11 = por %p1342_p4, %p1341_p8 }
  0x26   : > { %p1337_p12 = pneg %p1336_p9 }
  0x28   : > { %p1344_p10 = pnand %p1343_p11, %p1337_p12 }
  0x2a   : > { %1347 = shalt.err (!%p1344_p10)
}
  0x2b   : > { %s1433_s27 = smov 64   ;;  %s1434_s29 = smov 4  }
  0x2c   : > { %1213 = dma.hbm_to_vmem [thread:$0]  (!%p1536_p13), %s1767_s1, 2048, %s189_s10, [#allocation3], %s1433_s27, %s1433_s27, %s1434_s29  }
  0x2d   : > { %p1781_p0 = scmp.ne.s32.totalorder %s1778_s7, 0 }
  0x2e   : > { %p1782_p2 = scmp.ne.s32.totalorder (!%p1781_p0), %s1779_s8, 0 }
  0x2f   : > { %226 = sbr.rel (%p1781_p0) target bundleno = 671 (0x29f), region = 40 }
  0x36   : > { %1401 = dma.done.wait (%p1782_p2), [#allocation3], 2048  }
  0x37   : > { %1403 = vsyncadd (%p1782_p2), [#allocation3], 4294965248  ;;  %p259_p4 = scmp.lt.s32.totalorder %s1422_s21, 1  ;;  %v1435_v0 = vmov 0   ;;  %v318_v14 = vld [vmem:[%s1768_s2] sm:$0xff]  ;;  %v320_v15 = vld [vmem:[%s1768_s2 + $0x10] sm:$0xff] }
  0x38   : > { %718 = vmatprep.mubr.bf16.mxu0 %v1435_v0  ;;  %1275 = vset.pattern.permute.xlu0 %v1435_v0  ;;  %v319_v16 = vld [vmem:[%s1768_s2 + $0x8] sm:$0xff]  ;;  %v321_v19 = vld [vmem:[%s1768_s2 + $0x18] sm:$0xff]  ;;  %v322_v20 = vld [vmem:[%s1768_s2 + $0x20] sm:$0xff]  ;;  %s255_s7 = sand.u32 1, %s1414_s19   ;;  %p1783_p10 = scmp.ne.s32.totalorder %s1776_s28, 0 }
  0x39   : > { %s260_s11 = scalar_select %p259_p4, %s1422_s21, 1  ;;  %1276 = vset.pattern.permute.xlu1 %v1435_v0  ;;  %352 = vperm.xlu0 %1275, %v318_v14   ;;  %v323_v22 = vld [vmem:[%s1768_s2 + $0x28] sm:$0xff]  ;;  %v1301_v23 = vld [vmem:[#allocation2] sm:$0xff]   ;;  %v324_v24 = vld [vmem:[%s1768_s2 + $0x30] sm:$0xff] }
  0x3a   : > { %362 = vperm.xlu1 %1276, %v320_v15   ;;  %v325_v25 = vld [vmem:[%s1768_s2 + $0x38] sm:$0xff]  ;;  %v326_v26 = vld [vmem:[%s1768_s2 + $0x40] sm:$0xff]  ;;  %v327_v27 = vld [vmem:[%s1768_s2 + $0x48] sm:$0xff]  ;;  %s1160_s13 = sshll.u32 %s255_s7, 5  ;;  %s1436_s27 = smov [#allocation5]  }
  0x3b   : > { %s1202_s10 = sshll.u32 %s260_s11, 7  ;;  %v1302_v28 = vld [vmem:[#allocation2 + $0x8] sm:$0xff]   ;;  %v328_v29 = vld [vmem:[%s1768_s2 + $0x50] sm:$0xff]  ;;  %v329_v30 = vld [vmem:[%s1768_s2 + $0x58] sm:$0xff]  ;;  %s257_s8 = scalar_lea.vmem [#allocation5], %s1160_s13 }
  0x3c   : > { %s1570_s14 = scalar_lea.vmem %s1766_s0, %s1202_s10  ;;  %v330_v31 = vld [vmem:[%s1768_s2 + $0x60] sm:$0xff]  ;;  %v331_v32 = vld [vmem:[%s1768_s2 + $0x68] sm:$0xff]  ;;  %v1303_v33 = vld [vmem:[#allocation2 + $0x10] sm:$0xff]   ;;  %s1062_s15 = sshll.u32 %s257_s8, 4  ;;  %s1713_s15 = int_to_ptr.vmem [resolvable:$true] %s1062_s15 }
  0x3d   : > { %v1277_v1 = vld [vmem:[%s1570_s14 + $0x4] ss:$8 sps:$4 sm:$0xff]   ;;  %v1279_v2 = vld [vmem:[%s1570_s14] ss:$8 sps:$4 sm:$0xff]   ;;  %v1280_v3 = vld [vmem:[%s1570_s14 + $0x14] ss:$8 sps:$4 sm:$0xff]   ;;  %357 = vperm.xlu0 %1275, %v319_v16  }
  0x3e   : > { %686 = vmatprep.subr.bf16.mxu0 %v1277_v1  ;;  %v1282_v4 = vld [vmem:[%s1570_s14 + $0x10] ss:$8 sps:$4 sm:$0xff]   ;;  %v1283_v5 = vld [vmem:[%s1570_s14 + $0x24] ss:$8 sps:$4 sm:$0xff]   ;;  %v1285_v6 = vld [vmem:[%s1570_s14 + $0x20] ss:$8 sps:$4 sm:$0xff]   ;;  %367 = vperm.xlu1 %1276, %v321_v19  }
  0x3f   : > { %687 = vmatpush1.bf16.msra.mxu0 %v1279_v2  ;;  %v1286_v7 = vld [vmem:[%s1570_s14 + $0x34] ss:$8 sps:$4 sm:$0xff]   ;;  %v1288_v8 = vld [vmem:[%s1570_s14 + $0x30] ss:$8 sps:$4 sm:$0xff]   ;;  %v1289_v9 = vld [vmem:[%s1570_s14 + $0x44] ss:$8 sps:$4 sm:$0xff]  }
  0x40   : > { %688 = vmatprep.subr.bf16.mxu0 %v1280_v3  ;;  %v1291_v10 = vld [vmem:[%s1570_s14 + $0x40] ss:$8 sps:$4 sm:$0xff]   ;;  %v1292_v11 = vld [vmem:[%s1570_s14 + $0x54] ss:$8 sps:$4 sm:$0xff]   ;;  %v1294_v12 = vld [vmem:[%s1570_s14 + $0x50] ss:$8 sps:$4 sm:$0xff]  }
  0x41   : > { %v1295_v13 = vld [vmem:[%s1570_s14 + $0x64] ss:$8 sps:$4 sm:$0xff]   ;;  %v1297_v17 = vld [vmem:[%s1570_s14 + $0x60] ss:$8 sps:$4 sm:$0xff]   ;;  %v1298_v18 = vld [vmem:[%s1570_s14 + $0x74] ss:$8 sps:$4 sm:$0xff]   ;;  %372 = vperm.xlu0 %1275, %v322_v20  }
  0x42   : > { %v1300_v21 = vld [vmem:[%s1570_s14 + $0x70] ss:$8 sps:$4 sm:$0xff]   ;;  %377 = vperm.xlu1 %1276, %v323_v22   ;;  %v334_v36 = vld [vmem:[%s1768_s2 + $0x80] sm:$0xff]  ;;  %v335_v37 = vld [vmem:[%s1768_s2 + $0x88] sm:$0xff]  ;;  %s1203_s14 = sshll.u32 %s1422_s21, 9  ;;  %s1720_s21 = scalar_lea.sflag [#allocation4], %s255_s7 }
  0x43   : > { %689 = vmatpush1.bf16.msra.mxu0 %v1282_v4  ;;  %v332_v34 = vld [vmem:[%s1768_s2 + $0x70] sm:$0xff]  ;;  %v333_v35 = vld [vmem:[%s1768_s2 + $0x78] sm:$0xff]  ;;  %v338_v41 = vld [vmem:[%s1768_s2 + $0xa0] sm:$0xff]  ;;  %s1718_s24 = scalar_lea.hbm %s1771_s5, %s1203_s14  ;;  %s1348_s25 = scalar_lea.vmem %s1713_s15, 512 }
  0x44   : > { %690 = vmatprep.subr.bf16.mxu0 %v1283_v5  ;;  %v1304_v38 = vld [vmem:[#allocation2 + $0x18] sm:$0xff]   ;;  %v336_v39 = vld [vmem:[%s1768_s2 + $0x90] sm:$0xff]  ;;  %v339_v42 = vld [vmem:[%s1768_s2 + $0xa8] sm:$0xff]  ;;  %p1349_p8 = scmp.ne.s32.totalorder %s1713_s15, %s1348_s25  ;;  %s1352_s29 = sshll.u32 %s1436_s27, 4  ;;  %s1353_s29 = int_to_ptr.vmem [resolvable:$false] %s1352_s29 }
  0x45   : > { %382 = vperm.xlu0 %1275, %v324_v24   ;;  %v337_v40 = vld [vmem:[%s1768_s2 + $0x98] sm:$0xff]  ;;  %v1305_v43 = vld [vmem:[#allocation2 + $0x20] sm:$0xff]   ;;  %v340_v44 = vld [vmem:[%s1768_s2 + $0xb0] sm:$0xff]  ;;  %s1354_s9 = scalar_lea.vmem %s1353_s29, 1024  ;;  %p1355_p1 = scmp.lt.s32.totalorder %s1713_s15, %s1353_s29 }
  0x46   : > { %387 = vperm.xlu1 %1276, %v325_v25   ;;  %v341_v45 = vld [vmem:[%s1768_s2 + $0xb8] sm:$0xff]  ;;  %v342_v46 = vld [vmem:[%s1768_s2 + $0xc0] sm:$0xff]  ;;  %v343_v47 = vld [vmem:[%s1768_s2 + $0xc8] sm:$0xff]  ;;  %p1350_p11 = pnand %p1349_p8, %p1783_p10  ;;  %p1356_p3 = scmp.lt.s32.totalorder %s1354_s9, %s1348_s25 }
  0x47   : > { %691 = vmatpush1.bf16.msra.mxu0 %v1285_v6  ;;  %v1306_v48 = vld [vmem:[#allocation2 + $0x28] sm:$0xff]   ;;  %v344_v49 = vld [vmem:[%s1768_s2 + $0xd0] sm:$0xff]  ;;  %v345_v50 = vld [vmem:[%s1768_s2 + $0xd8] sm:$0xff] }
  0x48   : > { %692 = vmatprep.subr.bf16.mxu0 %v1286_v7  ;;  %v346_v51 = vld [vmem:[%s1768_s2 + $0xe0] sm:$0xff]  ;;  %v347_v52 = vld [vmem:[%s1768_s2 + $0xe8] sm:$0xff]  ;;  %v1307_v53 = vld [vmem:[#allocation2 + $0x30] sm:$0xff]   ;;  %p1351_p13 = pneg %p1350_p11  ;;  %p1357_p5 = por %p1356_p3, %p1355_p1 }
  0x49   : > { %392 = vperm.xlu0 %1275, %v326_v26   ;;  %v348_v54 = vld [vmem:[%s1768_s2 + $0xf0] sm:$0xff]  ;;  %v349_v55 = vld [vmem:[%s1768_s2 + $0xf8] sm:$0xff]  ;;  %v977_v56 = vld [vmem:[%s1770_s4] sm:$0xff] }
  0x4a   : > { %397 = vperm.xlu1 %1276, %v327_v27   ;;  %v978_v57 = vld [vmem:[%s1770_s4 + $0x8] sm:$0xff]  ;;  %v1308_v58 = vld [vmem:[#allocation2 + $0x38] sm:$0xff]   ;;  %v1309_v59 = vld [vmem:[#allocation2 + $0x40] sm:$0xff]   ;;  %p1358_p6 = pnand %p1357_p5, %p1351_p13 }
  0x4b   : > { %693 = vmatpush1.bf16.msra.mxu0 %v1288_v8  ;;  %v1310_v60 = vld [vmem:[#allocation2 + $0x48] sm:$0xff]   ;;  %v1311_v61 = vld [vmem:[#allocation2 + $0x50] sm:$0xff]   ;;  %v1312_v62 = vld [vmem:[#allocation2 + $0x58] sm:$0xff]  }
  0x4c   : > { %694 = vmatprep.subr.bf16.mxu0 %v1289_v9  ;;  %v1313_v63 = vld [vmem:[#allocation2 + $0x60] sm:$0xff]   ;;  %v1314_v1 = vld [vmem:[#allocation2 + $0x68] sm:$0xff]   ;;  %v1315_v2 = vld [vmem:[#allocation2 + $0x70] sm:$0xff]  }
  0x4d   : > { %402 = vperm.xlu0 %1275, %v328_v29   ;;  %v1316_v3 = vld [vmem:[#allocation2 + $0x78] sm:$0xff]  }
  0x4e   : > { %407 = vperm.xlu1 %1276, %v329_v30  }
  0x4f   : > { %695 = vmatpush1.bf16.msra.mxu0 %v1291_v10 }
  0x50   : > { %696 = vmatprep.subr.bf16.mxu0 %v1292_v11 }
  0x51   : > { %412 = vperm.xlu0 %1275, %v330_v31  }
  0x52   : > { %417 = vperm.xlu1 %1276, %v331_v32  }
  0x53   : > { %697 = vmatpush1.bf16.msra.mxu0 %v1294_v12 }
  0x54   : > { %698 = vmatprep.subr.bf16.mxu0 %v1295_v13  ;;  %v1319_v13 = vld [vmem:[%s1769_s3 + $0x4] ss:$8 sps:$4 sm:$0xff]  }
  0x55   : > { %422 = vperm.xlu0 %1275, %v332_v34   ;;  %1031 = vmatprep.mubr.bf16.mxu1 %v1319_v13 }
  0x56   : > { %427 = vperm.xlu1 %1276, %v333_v35  }
  0x57   : > { %699 = vmatpush1.bf16.msra.mxu0 %v1297_v17 }
  0x58   : > { %700 = vmatprep.subr.bf16.mxu0 %v1298_v18 }
  0x59   : > { %432 = vperm.xlu0 %1275, %v334_v36  }
  0x5a   : > { %437 = vperm.xlu1 %1276, %v335_v37  }
  0x5b   : > { %701 = vmatpush1.bf16.msra.mxu0 %v1300_v21 }
  0x5d   : > { %442 = vperm.xlu0 %1275, %v336_v39  }
  0x5e   : > { %719 = vmatmul.mubr.bf16.vlgmr.msra.gmra.mrb[0].mxu0 %v1301_v23  ;;  %447 = vperm.xlu1 %1276, %v337_v40  }
  0x5f   : > { %728 = vmatprep.mubr.bf16.mxu0 %v1435_v0 }
  0x61   : > { %452 = vperm.xlu0 %1275, %v338_v41  }
  0x62   : > { %457 = vperm.xlu1 %1276, %v339_v42  }
  0x65   : > { %462 = vperm.xlu0 %1275, %v340_v44  }
  0x66   : > { %729 = vmatmul.mubr.bf16.gmra.mrb[4].mxu0 %v1302_v28  ;;  %467 = vperm.xlu1 %1276, %v341_v45  }
  0x67   : > { %738 = vmatprep.mubr.bf16.mxu0 %v1435_v0 }
  0x69   : > { %472 = vperm.xlu0 %1275, %v342_v46  }
  0x6a   : > { %477 = vperm.xlu1 %1276, %v343_v47  }
  0x6d   : > { %482 = vperm.xlu0 %1275, %v344_v49  }
  0x6e   : > { %739 = vmatmul.mubr.bf16.gmra.mrb[8].mxu0 %v1303_v33  ;;  %487 = vperm.xlu1 %1276, %v345_v50  }
  0x6f   : > { %748 = vmatprep.mubr.bf16.mxu0 %v1435_v0 }
  0x71   : > { %492 = vperm.xlu0 %1275, %v346_v51  }
  0x72   : > { %497 = vperm.xlu1 %1276, %v347_v52  }
  0x75   : > { %502 = vperm.xlu0 %1275, %v348_v54  }
  0x76   : > { %749 = vmatmul.mubr.bf16.gmra.mrb[12].mxu0 %v1304_v38  ;;  %507 = vperm.xlu1 %1276, %v349_v55  }
  0x77   : > { %758 = vmatprep.mubr.bf16.mxu0 %v1435_v0 }
  0x79   : > { %981 = vperm.xlu0 %1275, %v977_v56  }
  0x7a   : > { %986 = vperm.xlu1 %1276, %v978_v57  }
  0x7e   : > { %759 = vmatmul.mubr.bf16.gmra.mrb[16].mxu0 %v1305_v43 }
  0x7f   : > { %768 = vmatprep.mubr.bf16.mxu0 %v1435_v0 }
  0x86   : > { %769 = vmatmul.mubr.bf16.gmra.mrb[20].mxu0 %v1306_v48 }
  0x87   : > { %778 = vmatprep.mubr.bf16.mxu0 %v1435_v0 }
  0x8e   : > { %779 = vmatmul.mubr.bf16.gmra.mrb[24].mxu0 %v1307_v53 }
  0x8f   : > { %788 = vmatprep.mubr.bf16.mxu0 %v1435_v0 }
  0x96   : > { %789 = vmatmul.mubr.bf16.gmra.mrb[28].mxu0 %v1308_v58 }
  0x97   : > { %798 = vmatprep.mubr.bf16.mxu0 %v1435_v0 }
  0x9e   : > { %799 = vmatmul.mubr.bf16.gmra.mrb[32].mxu0 %v1309_v59 }
  0x9f   : > { %808 = vmatprep.mubr.bf16.mxu0 %v1435_v0 }
  0xa6   : > { %809 = vmatmul.mubr.bf16.gmra.mrb[36].mxu0 %v1310_v60 }
  0xa7   : > { %818 = vmatprep.mubr.bf16.mxu0 %v1435_v0 }
  0xae   : > { %819 = vmatmul.mubr.bf16.gmra.mrb[40].mxu0 %v1311_v61 }
  0xaf   : > { %828 = vmatprep.mubr.bf16.mxu0 %v1435_v0 }
  0xb6   : > { %829 = vmatmul.mubr.bf16.gmra.mrb[44].mxu0 %v1312_v62 }
  0xb7   : > { %838 = vmatprep.mubr.bf16.mxu0 %v1435_v0 }
  0xb8   : > { %v353_v4 = vpop.permute.xlu0 %352 }
  0xb9   : > { %v363_v14 = vpop.permute.xlu1 %362 }
  0xbc   : > { %v358_v8 = vpop.permute.xlu0 %357 }
  0xbd   : > { %v368_v24 = vpop.permute.xlu1 %367 }
  0xbe   : > { %839 = vmatmul.mubr.bf16.gmra.mrb[48].mxu0 %v1313_v63 }
  0xbf   : > { %848 = vmatprep.mubr.bf16.mxu0 %v1435_v0 }
  0xc0   : > { %v373_v35 = vpop.permute.xlu0 %372 }
  0xc1   : > { %v378_v40 = vpop.permute.xlu1 %377 }
  0xc4   : > { %v383_v51 = vpop.permute.xlu0 %382 }
  0xc5   : > { %v388_v56 = vpop.permute.xlu1 %387 }
  0xc6   : > { %849 = vmatmul.mubr.bf16.gmra.mrb[52].mxu0 %v1314_v1 }
  0xc7   : > { %858 = vmatprep.mubr.bf16.mxu0 %v1435_v0 }
  0xce   : > { %859 = vmatmul.mubr.bf16.gmra.mrb[56].mxu0 %v1315_v2 }
  0xcf   : > { %868 = vmatprep.mubr.bf16.mxu0 %v1435_v0 }
  0xd6   : > { %869 = vmatmul.mubr.bf16.gmra.mrb[60].mxu0 %v1316_v3 }
 0x131   : > { %v720_v5 = vpop.f32.mrb[0].mxu0 }
 0x132   : > { %v721_v6 = vadd.f32 %v720_v5, %v353_v4  ;;  %v722_v7 = vpop.f32.mrb[1].mxu0 }
 0x133   : > { %v723_v9 = vadd.f32 %v722_v7, %v353_v4  ;;  %v724_v10 = vpop.f32.mrb[2].mxu0  ;;  %v393_v4 = vpop.permute.xlu0 %392 }
 0x134   : > { %v725_v11 = vadd.f32 %v724_v10, %v358_v8  ;;  %v726_v12 = vpop.f32.mrb[3].mxu0  ;;  %v879_v16 = vmax.f32 %v721_v6, 0.0 }
 0x135   : > { %v727_v15 = vadd.f32 %v726_v12, %v358_v8  ;;  %v880_v0 = vmax.f32 %v723_v9, 0.0  ;;  %v398_v9 = vpop.permute.xlu1 %397 }
 0x136   : > { %v881_v17 = vmax.f32 %v725_v11, 0.0 }
 0x137   : > { %v882_v18 = vmax.f32 %v727_v15, 0.0 }
 0x138   : > { %v943_v19 = vpack.c.bf16 %v881_v17, %v879_v16 }
 0x139   : > { %v730_v20 = vpop.f32.mrb[4].mxu0  ;;  %v944_v21 = vpack.c.bf16 %v882_v18, %v880_v0 }
 0x13a   : > { %v731_v22 = vadd.f32 %v730_v20, %v363_v14  ;;  %v732_v23 = vpop.f32.mrb[5].mxu0 }
 0x13b   : > { %v733_v25 = vadd.f32 %v732_v23, %v363_v14  ;;  %v734_v26 = vpop.f32.mrb[6].mxu0  ;;  %999 = vmatprep.subr.bf16.mxu1 %v944_v21 }
 0x13c   : > { %v735_v27 = vadd.f32 %v734_v26, %v368_v24  ;;  %v736_v28 = vpop.f32.mrb[7].mxu0  ;;  %1000 = vmatpush1.bf16.msra.mxu1 %v943_v19  ;;  %v883_v30 = vmax.f32 %v731_v22, 0.0  ;;  %v403_v19 = vpop.permute.xlu0 %402 }
 0x13d   : > { %v737_v29 = vadd.f32 %v736_v28, %v368_v24  ;;  %v884_v32 = vmax.f32 %v733_v25, 0.0  ;;  %v408_v24 = vpop.permute.xlu1 %407 }
 0x13e   : > { %v885_v31 = vmax.f32 %v735_v27, 0.0 }
 0x13f   : > { %v886_v33 = vmax.f32 %v737_v29, 0.0 }
 0x140   : > { %v945_v34 = vpack.c.bf16 %v885_v31, %v883_v30 }
 0x141   : > { %v946_v36 = vpack.c.bf16 %v886_v33, %v884_v32  ;;  %v740_v37 = vpop.f32.mrb[8].mxu0 }
 0x142   : > { %v741_v38 = vadd.f32 %v740_v37, %v373_v35  ;;  %v742_v39 = vpop.f32.mrb[9].mxu0 }
 0x143   : > { %v743_v41 = vadd.f32 %v742_v39, %v373_v35  ;;  %v744_v42 = vpop.f32.mrb[10].mxu0  ;;  %1001 = vmatprep.subr.bf16.mxu1 %v946_v36  ;;  %v413_v35 = vpop.permute.xlu0 %412 }
 0x144   : > { %v745_v43 = vadd.f32 %v744_v42, %v378_v40  ;;  %v746_v44 = vpop.f32.mrb[11].mxu0  ;;  %1002 = vmatpush1.bf16.msra.mxu1 %v945_v34  ;;  %v887_v46 = vmax.f32 %v741_v38, 0.0 }
 0x145   : > { %v747_v45 = vadd.f32 %v746_v44, %v378_v40  ;;  %v888_v48 = vmax.f32 %v743_v41, 0.0  ;;  %v418_v40 = vpop.permute.xlu1 %417 }
 0x146   : > { %v889_v47 = vmax.f32 %v745_v43, 0.0 }
 0x147   : > { %v890_v49 = vmax.f32 %v747_v45, 0.0 }
 0x148   : > { %v947_v50 = vpack.c.bf16 %v889_v47, %v887_v46 }
 0x149   : > { %v948_v52 = vpack.c.bf16 %v890_v49, %v888_v48  ;;  %v750_v53 = vpop.f32.mrb[12].mxu0 }
 0x14a   : > { %v751_v54 = vadd.f32 %v750_v53, %v383_v51  ;;  %v752_v55 = vpop.f32.mrb[13].mxu0 }
 0x14b   : > { %v753_v57 = vadd.f32 %v752_v55, %v383_v51  ;;  %v754_v58 = vpop.f32.mrb[14].mxu0  ;;  %1003 = vmatprep.subr.bf16.mxu1 %v948_v52  ;;  %v423_v51 = vpop.permute.xlu0 %422 }
 0x14c   : > { %v755_v59 = vadd.f32 %v754_v58, %v388_v56  ;;  %v756_v60 = vpop.f32.mrb[15].mxu0  ;;  %1004 = vmatpush1.bf16.msra.mxu1 %v947_v50  ;;  %v891_v62 = vmax.f32 %v751_v54, 0.0 }
 0x14d   : > { %v757_v61 = vadd.f32 %v756_v60, %v388_v56  ;;  %v892_v1 = vmax.f32 %v753_v57, 0.0  ;;  %v428_v56 = vpop.permute.xlu1 %427 }
 0x14e   : > { %v893_v63 = vmax.f32 %v755_v59, 0.0 }
 0x14f   : > { %v894_v2 = vmax.f32 %v757_v61, 0.0 }
 0x150   : > { %v949_v3 = vpack.c.bf16 %v893_v63, %v891_v62 }
 0x151   : > { %v950_v5 = vpack.c.bf16 %v894_v2, %v892_v1  ;;  %v760_v6 = vpop.f32.mrb[16].mxu0 }
 0x152   : > { %v761_v7 = vadd.f32 %v760_v6, %v393_v4  ;;  %v762_v8 = vpop.f32.mrb[17].mxu0 }
 0x153   : > { %v763_v10 = vadd.f32 %v762_v8, %v393_v4  ;;  %v764_v11 = vpop.f32.mrb[18].mxu0  ;;  %1005 = vmatprep.subr.bf16.mxu1 %v950_v5  ;;  %v433_v4 = vpop.permute.xlu0 %432 }
 0x154   : > { %v765_v12 = vadd.f32 %v764_v11, %v398_v9  ;;  %v766_v13 = vpop.f32.mrb[19].mxu0  ;;  %1006 = vmatpush1.bf16.msra.mxu1 %v949_v3  ;;  %v895_v15 = vmax.f32 %v761_v7, 0.0 }
 0x155   : > { %v767_v14 = vadd.f32 %v766_v13, %v398_v9  ;;  %v896_v17 = vmax.f32 %v763_v10, 0.0  ;;  %v438_v9 = vpop.permute.xlu1 %437 }
 0x156   : > { %v897_v16 = vmax.f32 %v765_v12, 0.0 }
 0x157   : > { %v898_v0 = vmax.f32 %v767_v14, 0.0 }
 0x158   : > { %v951_v18 = vpack.c.bf16 %v897_v16, %v895_v15 }
 0x159   : > { %v952_v20 = vpack.c.bf16 %v898_v0, %v896_v17  ;;  %v770_v21 = vpop.f32.mrb[20].mxu0 }
 0x15a   : > { %v771_v22 = vadd.f32 %v770_v21, %v403_v19  ;;  %v772_v23 = vpop.f32.mrb[21].mxu0 }
 0x15b   : > { %v773_v25 = vadd.f32 %v772_v23, %v403_v19  ;;  %v774_v26 = vpop.f32.mrb[22].mxu0  ;;  %1007 = vmatprep.subr.bf16.mxu1 %v952_v20  ;;  %v443_v19 = vpop.permute.xlu0 %442 }
 0x15c   : > { %v775_v27 = vadd.f32 %v774_v26, %v408_v24  ;;  %v776_v28 = vpop.f32.mrb[23].mxu0  ;;  %1008 = vmatpush1.bf16.msra.mxu1 %v951_v18  ;;  %v899_v30 = vmax.f32 %v771_v22, 0.0 }
 0x15d   : > { %v777_v29 = vadd.f32 %v776_v28, %v408_v24  ;;  %v900_v32 = vmax.f32 %v773_v25, 0.0  ;;  %v448_v24 = vpop.permute.xlu1 %447 }
 0x15e   : > { %v901_v31 = vmax.f32 %v775_v27, 0.0 }
 0x15f   : > { %v902_v33 = vmax.f32 %v777_v29, 0.0 }
 0x160   : > { %v953_v34 = vpack.c.bf16 %v901_v31, %v899_v30 }
 0x161   : > { %v954_v36 = vpack.c.bf16 %v902_v33, %v900_v32  ;;  %v780_v37 = vpop.f32.mrb[24].mxu0 }
 0x162   : > { %v781_v38 = vadd.f32 %v780_v37, %v413_v35  ;;  %v782_v39 = vpop.f32.mrb[25].mxu0 }
 0x163   : > { %v783_v41 = vadd.f32 %v782_v39, %v413_v35  ;;  %v784_v42 = vpop.f32.mrb[26].mxu0  ;;  %1009 = vmatprep.subr.bf16.mxu1 %v954_v36  ;;  %v453_v35 = vpop.permute.xlu0 %452 }
 0x164   : > { %v785_v43 = vadd.f32 %v784_v42, %v418_v40  ;;  %v786_v44 = vpop.f32.mrb[27].mxu0  ;;  %1010 = vmatpush1.bf16.msra.mxu1 %v953_v34  ;;  %v903_v46 = vmax.f32 %v781_v38, 0.0 }
 0x165   : > { %v787_v45 = vadd.f32 %v786_v44, %v418_v40  ;;  %v904_v48 = vmax.f32 %v783_v41, 0.0  ;;  %v458_v40 = vpop.permute.xlu1 %457 }
 0x166   : > { %v905_v47 = vmax.f32 %v785_v43, 0.0 }
 0x167   : > { %v906_v49 = vmax.f32 %v787_v45, 0.0 }
 0x168   : > { %v955_v50 = vpack.c.bf16 %v905_v47, %v903_v46 }
 0x169   : > { %v956_v52 = vpack.c.bf16 %v906_v49, %v904_v48  ;;  %v790_v53 = vpop.f32.mrb[28].mxu0 }
 0x16a   : > { %v791_v54 = vadd.f32 %v790_v53, %v423_v51  ;;  %v792_v55 = vpop.f32.mrb[29].mxu0 }
 0x16b   : > { %v793_v57 = vadd.f32 %v792_v55, %v423_v51  ;;  %v794_v58 = vpop.f32.mrb[30].mxu0  ;;  %1011 = vmatprep.subr.bf16.mxu1 %v956_v52  ;;  %v463_v51 = vpop.permute.xlu0 %462 }
 0x16c   : > { %v795_v59 = vadd.f32 %v794_v58, %v428_v56  ;;  %v796_v60 = vpop.f32.mrb[31].mxu0  ;;  %1012 = vmatpush1.bf16.msra.mxu1 %v955_v50  ;;  %v907_v62 = vmax.f32 %v791_v54, 0.0 }
 0x16d   : > { %v797_v61 = vadd.f32 %v796_v60, %v428_v56  ;;  %v908_v1 = vmax.f32 %v793_v57, 0.0  ;;  %v468_v56 = vpop.permute.xlu1 %467 }
 0x16e   : > { %v909_v63 = vmax.f32 %v795_v59, 0.0 }
 0x16f   : > { %v910_v2 = vmax.f32 %v797_v61, 0.0 }
 0x170   : > { %v957_v3 = vpack.c.bf16 %v909_v63, %v907_v62 }
 0x171   : > { %v958_v5 = vpack.c.bf16 %v910_v2, %v908_v1  ;;  %v800_v6 = vpop.f32.mrb[32].mxu0 }
 0x172   : > { %v801_v7 = vadd.f32 %v800_v6, %v433_v4  ;;  %v802_v8 = vpop.f32.mrb[33].mxu0 }
 0x173   : > { %v803_v10 = vadd.f32 %v802_v8, %v433_v4  ;;  %v804_v11 = vpop.f32.mrb[34].mxu0  ;;  %1013 = vmatprep.subr.bf16.mxu1 %v958_v5  ;;  %v473_v4 = vpop.permute.xlu0 %472 }
 0x174   : > { %v805_v12 = vadd.f32 %v804_v11, %v438_v9  ;;  %v806_v13 = vpop.f32.mrb[35].mxu0  ;;  %1014 = vmatpush1.bf16.msra.mxu1 %v957_v3  ;;  %v911_v15 = vmax.f32 %v801_v7, 0.0 }
 0x175   : > { %v807_v14 = vadd.f32 %v806_v13, %v438_v9  ;;  %v912_v17 = vmax.f32 %v803_v10, 0.0  ;;  %v478_v9 = vpop.permute.xlu1 %477 }
 0x176   : > { %v913_v16 = vmax.f32 %v805_v12, 0.0 }
 0x177   : > { %v914_v0 = vmax.f32 %v807_v14, 0.0 }
 0x178   : > { %v959_v18 = vpack.c.bf16 %v913_v16, %v911_v15 }
 0x179   : > { %v960_v20 = vpack.c.bf16 %v914_v0, %v912_v17  ;;  %v810_v21 = vpop.f32.mrb[36].mxu0 }
 0x17a   : > { %v811_v22 = vadd.f32 %v810_v21, %v443_v19  ;;  %v812_v23 = vpop.f32.mrb[37].mxu0 }
 0x17b   : > { %v813_v25 = vadd.f32 %v812_v23, %v443_v19  ;;  %v814_v26 = vpop.f32.mrb[38].mxu0  ;;  %1015 = vmatprep.subr.bf16.mxu1 %v960_v20  ;;  %v483_v19 = vpop.permute.xlu0 %482 }
 0x17c   : > { %v815_v27 = vadd.f32 %v814_v26, %v448_v24  ;;  %v816_v28 = vpop.f32.mrb[39].mxu0  ;;  %1016 = vmatpush1.bf16.msra.mxu1 %v959_v18  ;;  %v915_v30 = vmax.f32 %v811_v22, 0.0 }
 0x17d   : > { %v817_v29 = vadd.f32 %v816_v28, %v448_v24  ;;  %v916_v32 = vmax.f32 %v813_v25, 0.0  ;;  %v488_v24 = vpop.permute.xlu1 %487 }
 0x17e   : > { %v917_v31 = vmax.f32 %v815_v27, 0.0 }
 0x17f   : > { %v918_v33 = vmax.f32 %v817_v29, 0.0 }
 0x180   : > { %v961_v34 = vpack.c.bf16 %v917_v31, %v915_v30 }
 0x181   : > { %v962_v36 = vpack.c.bf16 %v918_v33, %v916_v32  ;;  %v820_v37 = vpop.f32.mrb[40].mxu0 }
 0x182   : > { %v821_v38 = vadd.f32 %v820_v37, %v453_v35  ;;  %v822_v39 = vpop.f32.mrb[41].mxu0 }
 0x183   : > { %v823_v41 = vadd.f32 %v822_v39, %v453_v35  ;;  %v824_v42 = vpop.f32.mrb[42].mxu0  ;;  %1017 = vmatprep.subr.bf16.mxu1 %v962_v36  ;;  %v493_v35 = vpop.permute.xlu0 %492 }
 0x184   : > { %v825_v43 = vadd.f32 %v824_v42, %v458_v40  ;;  %v826_v44 = vpop.f32.mrb[43].mxu0  ;;  %1018 = vmatpush1.bf16.msra.mxu1 %v961_v34  ;;  %v919_v46 = vmax.f32 %v821_v38, 0.0 }
 0x185   : > { %v827_v45 = vadd.f32 %v826_v44, %v458_v40  ;;  %v920_v48 = vmax.f32 %v823_v41, 0.0  ;;  %v498_v40 = vpop.permute.xlu1 %497 }
 0x186   : > { %v921_v47 = vmax.f32 %v825_v43, 0.0 }
 0x187   : > { %v922_v49 = vmax.f32 %v827_v45, 0.0 }
 0x188   : > { %v963_v50 = vpack.c.bf16 %v921_v47, %v919_v46 }
 0x189   : > { %v964_v52 = vpack.c.bf16 %v922_v49, %v920_v48  ;;  %v830_v53 = vpop.f32.mrb[44].mxu0 }
 0x18a   : > { %v831_v54 = vadd.f32 %v830_v53, %v463_v51  ;;  %v832_v55 = vpop.f32.mrb[45].mxu0 }
 0x18b   : > { %v833_v57 = vadd.f32 %v832_v55, %v463_v51  ;;  %v834_v58 = vpop.f32.mrb[46].mxu0  ;;  %1019 = vmatprep.subr.bf16.mxu1 %v964_v52  ;;  %v503_v51 = vpop.permute.xlu0 %502 }
 0x18c   : > { %v835_v59 = vadd.f32 %v834_v58, %v468_v56  ;;  %v836_v60 = vpop.f32.mrb[47].mxu0  ;;  %1020 = vmatpush1.bf16.msra.mxu1 %v963_v50  ;;  %v923_v62 = vmax.f32 %v831_v54, 0.0 }
 0x18d   : > { %v837_v61 = vadd.f32 %v836_v60, %v468_v56  ;;  %v924_v1 = vmax.f32 %v833_v57, 0.0  ;;  %v508_v56 = vpop.permute.xlu1 %507 }
 0x18e   : > { %v925_v63 = vmax.f32 %v835_v59, 0.0 }
 0x18f   : > { %v926_v2 = vmax.f32 %v837_v61, 0.0 }
 0x190   : > { %v965_v3 = vpack.c.bf16 %v925_v63, %v923_v62 }
 0x191   : > { %v966_v5 = vpack.c.bf16 %v926_v2, %v924_v1  ;;  %v840_v6 = vpop.f32.mrb[48].mxu0 }
 0x192   : > { %v841_v7 = vadd.f32 %v840_v6, %v473_v4  ;;  %v842_v8 = vpop.f32.mrb[49].mxu0  ;;  %v982_v6 = vpop.permute.xlu0 %981 }
 0x193   : > { %v843_v10 = vadd.f32 %v842_v8, %v473_v4  ;;  %v844_v11 = vpop.f32.mrb[50].mxu0  ;;  %1021 = vmatprep.subr.bf16.mxu1 %v966_v5  ;;  %v1317_v5 = vld [vmem:[%s1769_s3] ss:$8 sps:$4 sm:$0xff]  }
 0x194   : > { %v845_v12 = vadd.f32 %v844_v11, %v478_v9  ;;  %v846_v13 = vpop.f32.mrb[51].mxu0  ;;  %1022 = vmatpush1.bf16.msra.mxu1 %v965_v3  ;;  %v927_v15 = vmax.f32 %v841_v7, 0.0 }
 0x195   : > { %v847_v14 = vadd.f32 %v846_v13, %v478_v9  ;;  %v928_v17 = vmax.f32 %v843_v10, 0.0  ;;  %v987_v10 = vpop.permute.xlu1 %986 }
 0x196   : > { %v929_v16 = vmax.f32 %v845_v12, 0.0 }
 0x197   : > { %v930_v0 = vmax.f32 %v847_v14, 0.0 }
 0x198   : > { %v967_v18 = vpack.c.bf16 %v929_v16, %v927_v15 }
 0x199   : > { %v968_v20 = vpack.c.bf16 %v930_v0, %v928_v17  ;;  %v850_v21 = vpop.f32.mrb[52].mxu0 }
 0x19a   : > { %v851_v22 = vadd.f32 %v850_v21, %v483_v19  ;;  %v852_v23 = vpop.f32.mrb[53].mxu0 }
 0x19b   : > { %v853_v25 = vadd.f32 %v852_v23, %v483_v19  ;;  %v854_v26 = vpop.f32.mrb[54].mxu0  ;;  %1023 = vmatprep.subr.bf16.mxu1 %v968_v20 }
 0x19c   : > { %v855_v27 = vadd.f32 %v854_v26, %v488_v24  ;;  %v856_v28 = vpop.f32.mrb[55].mxu0  ;;  %1024 = vmatpush1.bf16.msra.mxu1 %v967_v18  ;;  %v931_v30 = vmax.f32 %v851_v22, 0.0 }
 0x19d   : > { %v857_v29 = vadd.f32 %v856_v28, %v488_v24  ;;  %v932_v32 = vmax.f32 %v853_v25, 0.0 }
 0x19e   : > { %v933_v31 = vmax.f32 %v855_v27, 0.0 }
 0x19f   : > { %v934_v33 = vmax.f32 %v857_v29, 0.0 }
 0x1a0   : > { %v969_v34 = vpack.c.bf16 %v933_v31, %v931_v30 }
 0x1a1   : > { %v970_v36 = vpack.c.bf16 %v934_v33, %v932_v32  ;;  %v860_v37 = vpop.f32.mrb[56].mxu0 }
 0x1a2   : > { %v861_v38 = vadd.f32 %v860_v37, %v493_v35  ;;  %v862_v39 = vpop.f32.mrb[57].mxu0 }
 0x1a3   : > { %v863_v41 = vadd.f32 %v862_v39, %v493_v35  ;;  %v864_v42 = vpop.f32.mrb[58].mxu0  ;;  %1025 = vmatprep.subr.bf16.mxu1 %v970_v36 }
 0x1a4   : > { %v865_v43 = vadd.f32 %v864_v42, %v498_v40  ;;  %v866_v44 = vpop.f32.mrb[59].mxu0  ;;  %1026 = vmatpush1.bf16.msra.mxu1 %v969_v34  ;;  %v935_v46 = vmax.f32 %v861_v38, 0.0 }
 0x1a5   : > { %v867_v45 = vadd.f32 %v866_v44, %v498_v40  ;;  %v936_v48 = vmax.f32 %v863_v41, 0.0 }
 0x1a6   : > { %v937_v47 = vmax.f32 %v865_v43, 0.0 }
 0x1a7   : > { %v938_v49 = vmax.f32 %v867_v45, 0.0 }
 0x1a8   : > { %v971_v50 = vpack.c.bf16 %v937_v47, %v935_v46 }
 0x1a9   : > { %v972_v52 = vpack.c.bf16 %v938_v49, %v936_v48  ;;  %v870_v53 = vpop.f32.mrb[60].mxu0 }
 0x1aa   : > { %v871_v54 = vadd.f32 %v870_v53, %v503_v51  ;;  %v872_v55 = vpop.f32.mrb[61].mxu0 }
 0x1ab   : > { %v873_v57 = vadd.f32 %v872_v55, %v503_v51  ;;  %v874_v58 = vpop.f32.mrb[62].mxu0  ;;  %1027 = vmatprep.subr.bf16.mxu1 %v972_v52 }
 0x1ac   : > { %v875_v59 = vadd.f32 %v874_v58, %v508_v56  ;;  %v876_v60 = vpop.f32.mrb[63].mxu0  ;;  %1028 = vmatpush1.bf16.msra.mxu1 %v971_v50  ;;  %v939_v62 = vmax.f32 %v871_v54, 0.0 }
 0x1ad   : > { %v877_v61 = vadd.f32 %v876_v60, %v508_v56  ;;  %v940_v1 = vmax.f32 %v873_v57, 0.0 }
 0x1ae   : > { %v941_v63 = vmax.f32 %v875_v59, 0.0 }
 0x1af   : > { %v942_v2 = vmax.f32 %v877_v61, 0.0 }
 0x1b0   : > { %v973_v3 = vpack.c.bf16 %v941_v63, %v939_v62 }
 0x1b1   : > { %v974_v4 = vpack.c.bf16 %v942_v2, %v940_v1 }
 0x1b3   : > { %1029 = vmatprep.subr.bf16.mxu1 %v974_v4 }
 0x1b4   : > { %1030 = vmatpush1.bf16.msra.mxu1 %v973_v3 }
 0x1b7   : > { %1032 = vmatmul.mubr.bf16.vlgmr.msra.gmra.mrb[0].mxu1 %v1317_v5 }
 0x28a   : > { %v1033_v7 = vpop.f32.mrb[0].mxu1 }
 0x28b   : > { %v1034_v8 = vadd.f32 %v1033_v7, %v982_v6  ;;  %v1035_v9 = vpop.f32.mrb[1].mxu1 }
 0x28c   : > { %v1036_v11 = vadd.f32 %v1035_v9, %v982_v6  ;;  %v1037_v12 = vpop.f32.mrb[2].mxu1 }
 0x28d   : > { %1042 = vst [vmem:[%s257_s8] sm:$0xff] %v1034_v8  ;;  %v1038_v13 = vadd.f32 %v1037_v12, %v987_v10  ;;  %v1039_v14 = vpop.f32.mrb[3].mxu1 }
 0x28e   : > { %1043 = vst [vmem:[%s257_s8 + $0x8] sm:$0xff] %v1036_v11  ;;  %v1040_v15 = vadd.f32 %v1039_v14, %v987_v10 }
 0x28f   : > { %1044 = vst [vmem:[%s257_s8 + $0x10] sm:$0xff] %v1038_v13 }
 0x290   : > { %1045 = vst [vmem:[%s257_s8 + $0x18] sm:$0xff] %v1040_v15 }
 0x291   : > { %1361 = shalt.err (!%p1358_p6)
}
 0x292   : > { %s1362_s12 = scalar_lea.hbm %s1718_s24, 512  ;;  %s1366_s7 = scalar_lea.hbm %s1771_s5, 1024 }
 0x293   : > { %p1363_p7 = scmp.ne.s32.totalorder %s1718_s24, %s1362_s12  ;;  %p1367_p0 = scmp.lt.u32.totalorder %s1718_s24, %s1771_s5 }
 0x294   : > { %p1368_p2 = scmp.lt.u32.totalorder %s1366_s7, %s1362_s12  ;;  %p1370_p8 = scmp.lt.u32.totalorder %s1362_s12, %s1718_s24 }
 0x295   : > { %p1364_p9 = pnand %p1363_p7, %p1783_p10 }
 0x296   : > { %p1369_p4 = por %p1368_p2, %p1367_p0 }
 0x297   : > { %p1365_p12 = pneg %p1364_p9 }
 0x298   : > { %p1371_p11 = por %p1370_p8, %p1369_p4 }
 0x29a   : > { %p1372_p13 = pnand %p1371_p11, %p1365_p12 }
 0x29c   : > { %1375 = shalt.err (!%p1372_p13)
}
 0x29d   : > { %s1437_s14 = smov 256   ;;  %s1438_s16 = smov 16  }
 0x29e   : > { %1208 = dma.vmem_to_hbm [thread:$0]  (%p1783_p10), %s1713_s15, 512, %s1718_s24, %s1720_s21, %s1437_s14, %s1437_s14, %s1438_s16  }
 0x29f PF: > { %p1220_p1 = scmp.ge.s32.totalorder %s1430_s23, 2  ;;  %s1077_s17 = sand.u32 1, %s1410_s18  }
 0x2a0   : > { %p1784_p3 = scmp.ne.s32.totalorder %s1777_s30, 0  ;;  %s1078_s25 = scalar_lea.sflag [#allocation4], %s1077_s17 }
 0x2a2   : > { %p1215_p5 = pnand %p1220_p1, %p1784_p3 }
 0x2a4   : > { %1405 = dma.done.wait (!%p1215_p5), %s1078_s25, 512  }
 0x2a5   : > { %1407 = vsyncadd (!%p1215_p5), %s1078_s25, 4294966784  ;;  %s19_s23 = sadd.s32 1, %s1430_s23   ;;  %s1785_s18 = smov %s1414_s19 }
 0x2a6   : > { %p16_p6 = scmp.ge.s32.totalorder %s19_s23, 4   ;;  %s1786_s19 = smov %s1418_s20 }
 0x2a7   : > { %s1787_s20 = smov %s1522_s6  ;;  %s1788_s21 = smov %s1426_s22 }
 0x2a8   : > { %s1789_s22 = smov %s1791_s26  ;;  %18 = sbr.rel (!%p16_p6) target bundleno = 5 (0x5), region = 80 }
 0x2af   :  { %1083 = vsyncpa [#allocation3], 1 }
 0x2b0   :  { %1085 = vsyncpa [#allocation3 + $0x1], 1 }
 0x2b1   :  { %1086 = vsyncpa [#allocation4], 1 }
 0x2b2   :  { %1088 = vsyncpa [#allocation4 + $0x1], 1 }

</bundles_post_ra>
